<compile_context>
chip_gen: v6e
topology: v6e:2x2x1
jax: 0.10.0
libtpu: 0.0.40
codegen_flags: <defaults>
</compile_context>

<pallas_src>
import jax
import jax.numpy as jnp
from jax import lax
from jax.experimental import pallas as pl
from jax.experimental.pallas import tpu as pltpu


def _round_up(x: int, m: int) -> int:
    return (x + m - 1) // m * m


def _bn2d_kernel(x_ref, p_ref, o_ref):
    # x_ref block: (tR, tHW) in input dtype; p_ref block: (tR, 2) f32 = [scale | bias].
    x = x_ref[...].astype(jnp.float32)
    p = p_ref[...]
    scale = p[:, 0:1]          # (tR, 1)
    bias = p[:, 1:2]           # (tR, 1)
    o_ref[...] = (x * scale + bias).astype(o_ref.dtype)


def _device_kind() -> str:
    try:
        return jax.devices()[0].device_kind.lower()
    except Exception:
        return ""


def _per_buffer_budget_bytes() -> int:
    kind = _device_kind()
    # v5e: 16 MiB default scoped VMEM -> keep double-buffered in+out at ~8 MiB.
    if "v5 lite" in kind or "v5lite" in kind or "v5e" in kind:
        return 2 * 1024 * 1024
    # v6e / v7x (and default): ~4 MiB per buffer amortizes the ~0.35 us/step overhead.
    return 4 * 1024 * 1024


def _preferred_dim_semantics():
    kind = _device_kind()
    if "v7" in kind or "7x" in kind:
        # 2 TensorCores per chip: actually shard the row-tile axis across cores.
        return (pltpu.CORE_PARALLEL, pltpu.ARBITRARY)
    return ("parallel", "parallel")


def custom_batchnorm2d(x, gamma, beta, running_mean, running_var, eps=1e-5):
    """Inference-mode BatchNorm2d over NCHW input; hot path in Pallas."""
    N, C, H, W = x.shape
    HW = H * W
    NC = N * C

    # ---- fold the 4 per-channel params into (scale, bias), in float32 ----
    g = gamma.astype(jnp.float32)
    b = beta.astype(jnp.float32)
    m = running_mean.astype(jnp.float32)
    v = running_var.astype(jnp.float32)
    scale = g * lax.rsqrt(v + jnp.float32(eps))           # gamma / sqrt(var + eps)
    bias = b - m * scale                                   # beta - mean * scale
    # One packed param stream, replicated per batch so row r = n*C + c uses channel c.
    params = jnp.tile(jnp.stack([scale, bias], axis=-1), (N, 1))   # (N*C, 2) f32

    # ---- layout: collapse (N, C) into sublane-dense rows (free reshape) ----
    xr = x.reshape(NC, HW)

    # ---- tile-size selection (lane-dense, VMEM-budgeted per generation) ----
    itemsize = jnp.dtype(x.dtype).itemsize
    budget = _per_buffer_budget_bytes()
    tHW = min(4096, _round_up(HW, 128))                    # lane axis, multiple of 128
    rows = max(8, (budget // itemsize) // tHW)
    tR = max(8, min((rows // 8) * 8, _round_up(NC, 8)))    # sublane axis, multiple of 8

    grid = (pl.cdiv(NC, tR), pl.cdiv(HW, tHW))

    cost = pl.CostEstimate(
        flops=2 * NC * HW,
        transcendentals=0,
        bytes_accessed=2 * NC * HW * itemsize + NC * 2 * 4,
    )

    def run(dim_sem):
        return pl.pallas_call(
            _bn2d_kernel,
            out_shape=jax.ShapeDtypeStruct((NC, HW), x.dtype),
            grid_spec=pltpu.PrefetchScalarGridSpec(
                num_scalar_prefetch=0,
                grid=grid,
                in_specs=[
                    pl.BlockSpec((tR, tHW), lambda r, h: (r, h)),   # x rows
                    pl.BlockSpec((tR, 2), lambda r, h: (r, 0)),     # packed scale/bias
                ],
                out_specs=pl.BlockSpec((tR, tHW), lambda r, h: (r, h)),
            ),
            compiler_params=pltpu.CompilerParams(
                dimension_semantics=dim_sem,
                vmem_limit_bytes=32 * 1024 * 1024,
            ),
            cost_estimate=cost,
        )(xr, params)

    preferred = _preferred_dim_semantics()
    try:
        out = run(preferred)
    except Exception:
        if preferred == ("parallel", "parallel"):
            raise
        out = run(("parallel", "parallel"))   # safe fallback if CORE_PARALLEL is rejected

    return out.reshape(N, C, H, W)

    # TODO(synk): training-mode branch (batch statistics + running-buffer update) is
    # stateful and intentionally not implemented; the module fixes self.training=False.


if __name__ == "__main__":
    def reference(x, gamma, beta, rm, rv, eps):
        C = x.shape[1]
        mean = rm.reshape(1, C, 1, 1)
        var = rv.reshape(1, C, 1, 1)
        return gamma.reshape(1, C, 1, 1) * (x - mean) / jnp.sqrt(var + eps) \
            + beta.reshape(1, C, 1, 1)

    eps = 1e-5

    # Primary shape, per the module (num_features = C = 4).
    N, C, H, W = 2, 4, 16, 16
    kx, kg, kb, km, kv = jax.random.split(jax.random.PRNGKey(0), 5)
    x = jax.random.normal(kx, (N, C, H, W), dtype=jnp.float32)
    gamma = 1.0 + 0.1 * jax.random.normal(kg, (C,), jnp.float32)
    beta = 0.1 * jax.random.normal(kb, (C,), jnp.float32)
    running_mean = 0.1 * jax.random.normal(km, (C,), jnp.float32)
    running_var = 1.0 + 0.1 * jnp.abs(jax.random.normal(kv, (C,), jnp.float32))

    out = jax.block_until_ready(
        custom_batchnorm2d(x, gamma, beta, running_mean, running_var, eps=eps)
    )
    ref = reference(x, gamma, beta, running_mean, running_var, eps)
    assert out.shape == (N, C, H, W)
    assert jnp.allclose(out, ref, atol=1e-5, rtol=1e-5), "mismatch vs reference"

    # Ragged shape: exercises the masked last-block path that replaced the pad/slice.
    N2, C2, H2, W2 = 1, 3, 5, 5
    kx2, kg2, kb2, km2, kv2 = jax.random.split(jax.random.PRNGKey(1), 5)
    x2 = jax.random.normal(kx2, (N2, C2, H2, W2), dtype=jnp.float32)
    g2 = 1.0 + 0.1 * jax.random.normal(kg2, (C2,), jnp.float32)
    b2 = 0.1 * jax.random.normal(kb2, (C2,), jnp.float32)
    m2 = 0.1 * jax.random.normal(km2, (C2,), jnp.float32)
    v2 = 1.0 + 0.1 * jnp.abs(jax.random.normal(kv2, (C2,), jnp.float32))

    out2 = jax.block_until_ready(custom_batchnorm2d(x2, g2, b2, m2, v2, eps=eps))
    ref2 = reference(x2, g2, b2, m2, v2, eps)
    assert jnp.allclose(out2, ref2, atol=1e-5, rtol=1e-5), "ragged-shape mismatch"

    print("KERNEL_OK")
</pallas_src>

<mosaic_0001>
module attributes {stable_mosaic.version = 11 : i64} {
  func.func @_bn2d_kernel(%arg0: i32, %arg1: i32, %arg2: memref<8x256xf32, #tpu.memory_space<vmem>>, %arg3: memref<8x2xf32, #tpu.memory_space<vmem>>, %arg4: memref<8x256xf32, #tpu.memory_space<vmem>>) attributes {dimension_semantics = [#tpu.dimension_semantics<parallel>, #tpu.dimension_semantics<parallel>], iteration_bounds = array<i64: 1, 1>, scalar_prefetch = 0 : i64, scratch_operands = 0 : i64, tpu.core_type = #tpu.core_type<tc>, window_params = [{transform_indices = @transform_0, window_bounds = array<i64: 8, 256>}, {transform_indices = @transform_1, window_bounds = array<i64: 8, 2>}, {transform_indices = @transform_2, window_bounds = array<i64: 8, 256>}]} {
    %c0 = arith.constant 0 : index
    %c0_0 = arith.constant 0 : index
    %0 = vector.load %arg2[%c0, %c0_0] : memref<8x256xf32, #tpu.memory_space<vmem>>, vector<8x256xf32>
    %c0_1 = arith.constant 0 : index
    %c0_2 = arith.constant 0 : index
    %1 = vector.load %arg3[%c0_1, %c0_2] : memref<8x2xf32, #tpu.memory_space<vmem>>, vector<8x2xf32>
    %2 = vector.extract_strided_slice %1 {offsets = [0, 0], sizes = [8, 1], strides = [1, 1]} : vector<8x2xf32> to vector<8x1xf32>
    %3 = vector.extract_strided_slice %1 {offsets = [0, 1], sizes = [8, 1], strides = [1, 1]} : vector<8x2xf32> to vector<8x1xf32>
    %4 = vector.broadcast %2 : vector<8x1xf32> to vector<8x256xf32>
    %5 = arith.mulf %0, %4 : vector<8x256xf32>
    %6 = vector.broadcast %3 : vector<8x1xf32> to vector<8x256xf32>
    %7 = arith.addf %5, %6 : vector<8x256xf32>
    %c0_3 = arith.constant 0 : index
    %c0_4 = arith.constant 0 : index
    %8 = vector.load %arg4[%c0_3, %c0_4] : memref<8x256xf32, #tpu.memory_space<vmem>>, vector<8x256xf32>
    tpu.vector_store %arg4[%c0_3, %c0_4], %7 {strides = array<i32>} : memref<8x256xf32, #tpu.memory_space<vmem>>, vector<8x256xf32>,
    return
  }
  func.func @transform_0(%arg0: i32, %arg1: i32) -> (i32, i32) {
    %c0_i32 = arith.constant 0 : i32
    return %arg0, %arg1 : i32, i32
  }
  func.func @transform_1(%arg0: i32, %arg1: i32) -> (i32, i32) {
    %c0_i32 = arith.constant 0 : i32
    %c0_i32_0 = arith.constant 0 : i32
    return %arg0, %c0_i32 : i32, i32
  }
  func.func @transform_2(%arg0: i32, %arg1: i32) -> (i32, i32) {
    %c0_i32 = arith.constant 0 : i32
    return %arg0, %arg1 : i32, i32
  }
}

</mosaic_0001>

<bundles_post_ra>
// kernel: tpu_custom_call.1
= control target key start
LH: loop header
LB: loop body
LE: loop exit
PB: predicated region body
PF: predicated region fallthrough
CT: control target
= control target key end

     0   :  { %7 = vsyncpa [#allocation3], 0  ;;  %s135_s0 = inlined_call_operand.hbm [shape: f32[8,256], index: 0, kind: input, shape index: {}]   ;;  %s136_s1 = inlined_call_operand.vmem [shape: f32[8,2], index: 1, kind: input, shape index: {}]   ;;  %s137_s2 = inlined_call_operand.hbm [shape: f32[8,256], index: 2, kind: output, shape index: {}]  }
   0x1   :  { %8 = vsyncpa [#allocation4], 0  ;;  %s107_s9 = smov [#allocation2]  }
   0x2   :  { %s15_s10 = sshll.u32 %s107_s9, 4  ;;  %s16_s10 = int_to_ptr.vmem [resolvable:$true] %s15_s10 }
   0x3   :  { %s71_s11 = scalar_lea.vmem %s16_s10, 256  ;;  %p76_p1 = scmp.lt.s32.totalorder %s16_s10, %s16_s10 }
   0x4   :  { %p72_p0 = scmp.ne.s32.totalorder %s16_s10, %s71_s11  ;;  %p77_p2 = scmp.lt.s32.totalorder %s71_s11, %s71_s11 }
   0x6   :  { %p78_p3 = por %p77_p2, %p76_p1 }
   0x8   :  { %p79_p4 = pnand %p78_p3, %p72_p0 }
   0xa   :  { %82 = shalt.err (!%p79_p4)
}
   0xb   :  { %18 = dma.hbm_to_vmem [thread:$0]  %s135_s0, 256, %s16_s10, [#allocation3]  }
   0xc   :  { %103 = dma.done.wait [#allocation3], 256  }
   0xd   :  { %104 = vsyncadd [#allocation3], 4294967040  ;;  %v108_v0 = vmov 0   ;;  %v26_v1 = vld [vmem:[%s136_s1] sm:$0xff]  ;;  %v109_v2 = vmov 1   ;;  %v25_v5 = vld [vmem:[#allocation2 + $0x8] sm:$0xff] }
   0xe   :  { %61 = vset.pattern.permute.xlu0 %v108_v0  ;;  %v24_v4 = vld [vmem:[#allocation2] sm:$0xff]  ;;  %s110_s16 = smov [#allocation5]  }
   0xf   :  { %29 = vperm.xlu0 %61, %v26_v1   ;;  %s48_s17 = sshll.u32 %s110_s16, 4  ;;  %s49_s17 = int_to_ptr.vmem [resolvable:$true] %s48_s17 }
  0x10   :  { %s83_s0 = scalar_lea.vmem %s49_s17, 256  ;;  %p88_p6 = scmp.lt.s32.totalorder %s49_s17, %s49_s17 }
  0x11   :  { %p84_p5 = scmp.ne.s32.totalorder %s49_s17, %s83_s0  ;;  %p89_p7 = scmp.lt.s32.totalorder %s83_s0, %s83_s0 }
  0x13   :  { %62 = vset.pattern.permute.xlu0 %v109_v2  ;;  %p90_p8 = por %p89_p7, %p88_p6 }
  0x14   :  { %35 = vperm.xlu0 %62, %v26_v1  }
  0x15   :  { %p91_p9 = pnand %p90_p8, %p84_p5 }
  0x8a   :  { %v30_v3 = vpop.permute.xlu0 %29 }
  0x8b   :  { %v32_v6 = vmul.f32 %v30_v3, %v24_v4  ;;  %v33_v7 = vmul.f32 %v30_v3, %v25_v5 }
  0x8f   :  { %v36_v8 = vpop.permute.xlu0 %35 }
  0x90   :  { %v38_v9 = vadd.f32 %v36_v8, %v32_v6  ;;  %v39_v10 = vadd.f32 %v36_v8, %v33_v7 }
  0x92   :  { %40 = vst [vmem:[#allocation5] sm:$0xff] %v38_v9  ;;  %41 = vst [vmem:[#allocation5 + $0x8] sm:$0xff] %v39_v10 }
  0x93   :  { %94 = shalt.err (!%p91_p9)
}
  0x94   :  { %51 = dma.vmem_to_hbm [thread:$0]  %s49_s17, 256, %s137_s2, [#allocation4]  }
  0x95   :  { %105 = dma.done.wait [#allocation4], 256  }
  0x96   :  { %106 = vsyncadd [#allocation4], 4294967040 }
  0x97   :  { %55 = vsyncpa [#allocation3], 1 }
  0x98   :  { %56 = vsyncpa [#allocation4], 1 }

</bundles_post_ra>
